<compile_context>
chip_gen: v5e
topology: v5e:2x2
jax: 0.10.0
libtpu: 0.0.40
codegen_flags: <defaults>
</compile_context>

<pallas_src>
import jax
import jax.numpy as jnp
from jax.experimental import pallas as pl
from jax.experimental.pallas import tpu as pltpu


def _proto_kernel(t_ref, x_ref, ct_ref, c2_ref, o_ref):
    # t_ref : SMEM (1,)  temperature scalar
    # x_ref : (TB, D)    batch tile of features (dot dtype, e.g. bf16)
    # ct_ref: (D, Cp)    pre-transposed centers (dot dtype), resident
    # c2_ref: (1, Cp)    f32 squared center norms (padding columns = 1e30)
    # o_ref : (TB, Cp)   softmax probabilities (f32)
    T = t_ref[0]

    x = x_ref[...]
    xf = x.astype(jnp.float32)
    x2 = jnp.sum(xf * xf, axis=-1, keepdims=True)                     # (TB, 1)

    # cross term on the MXU: NN matmul, lane-dense class axis, f32 accumulate
    xc = jnp.dot(x, ct_ref[...], preferred_element_type=jnp.float32)  # (TB, Cp)

    d2 = jnp.maximum(x2 + c2_ref[...] - 2.0 * xc, 0.0)
    logits = -jnp.sqrt(d2) * T                                        # (TB, Cp)

    # softmax along the class axis (max-subtracted for stability)
    m = jnp.max(logits, axis=-1, keepdims=True)
    e = jnp.exp(logits - m)
    s = jnp.sum(e, axis=-1, keepdims=True)
    o_ref[...] = (e * pl.reciprocal(s, approx=True)).astype(o_ref.dtype)


def proto_classifier_forward(x, center, T=1.0, *, tb=256, dot_dtype=jnp.bfloat16):
    """x: (B, D) float32, center: (C, D) float32 -> (B, C) float32 probs."""
    B, D = x.shape
    C, Dc = center.shape
    assert D == Dc

    # Lane-dense class axis: pad C up to a multiple of 128.
    Cp = ((C + 127) // 128) * 128
    # Large batch tile for MXU/pipeline efficiency, but never bigger than the
    # (sublane-rounded) batch; pad B up to a tile multiple.
    tb_eff = min(tb, ((B + 7) // 8) * 8)
    Bp = ((B + tb_eff - 1) // tb_eff) * tb_eff

    center_f32 = center.astype(jnp.float32)
    # Loop-invariant prototype norms, computed once (exact f32), padded classes
    # get a huge norm so their softmax weight underflows to zero.
    c2 = jnp.sum(center_f32 * center_f32, axis=-1)                    # (C,)
    c2 = jnp.pad(c2, (0, Cp - C), constant_values=1e30)[None, :]      # (1, Cp)

    # Pre-transposed (D, Cp) centers and padded batch, in the MXU input dtype.
    ct = jnp.pad(center_f32.T, ((0, 0), (0, Cp - C))).astype(dot_dtype)
    xp = jnp.pad(x, ((0, Bp - B), (0, 0))).astype(dot_dtype)

    t_arr = jnp.array([T], dtype=jnp.float32)

    out = pl.pallas_call(
        _proto_kernel,
        out_shape=jax.ShapeDtypeStruct((Bp, Cp), jnp.float32),
        grid=(Bp // tb_eff,),
        in_specs=[
            pl.BlockSpec(memory_space=pltpu.MemorySpace.SMEM),        # T scalar
            pl.BlockSpec((tb_eff, D), lambda i: (i, 0)),              # x batch tile
            pl.BlockSpec((D, Cp), lambda i: (0, 0)),                  # centers^T (resident)
            pl.BlockSpec((1, Cp), lambda i: (0, 0)),                  # center norms (resident)
        ],
        out_specs=pl.BlockSpec((tb_eff, Cp), lambda i: (i, 0)),
        compiler_params=pltpu.CompilerParams(
            dimension_semantics=("parallel",),
            vmem_limit_bytes=48 * 1024 * 1024,
        ),
    )(t_arr, xp, ct, c2)
    return out[:B, :C]


if __name__ == "__main__":
    # Small, deterministic synthetic setup.
    # ProtoClassifier(size=C): `center` is (C, D) (normally set by .init()),
    # here initialized deterministically in-script.
    B, D, C = 8, 32, 16
    key = jax.random.PRNGKey(0)
    kx, kc = jax.random.split(key)
    x = jax.random.normal(kx, (B, D), dtype=jnp.float32)
    center = jax.random.normal(kc, (C, D), dtype=jnp.float32)
    T = 1.0

    # Reference in plain JAX (same math as torch.cdist + softmax), full f32.
    ref_dist = jnp.sqrt(jnp.maximum(
        jnp.sum(x * x, -1, keepdims=True)
        + jnp.sum(center * center, -1)[None, :]
        - 2.0 * x @ center.T, 0.0))
    ref = jax.nn.softmax(-ref_dist * T, axis=1)

    # Default path: bf16 MXU inputs, f32 accumulate/softmax.
    out_bf16 = jax.block_until_ready(proto_classifier_forward(x, center, T))
    assert out_bf16.shape == (B, C)
    assert jnp.allclose(out_bf16, ref, atol=3e-2)
    assert jnp.allclose(jnp.sum(out_bf16, axis=1), 1.0, atol=3e-2)

    # Full-f32 matmul path: tighter agreement with the reference.
    out_f32 = jax.block_until_ready(
        proto_classifier_forward(x, center, T, dot_dtype=jnp.float32))
    assert out_f32.shape == (B, C)
    assert jnp.allclose(out_f32, ref, atol=1e-2)
    assert jnp.allclose(jnp.sum(out_f32, axis=1), 1.0, atol=3e-2)

    print("KERNEL_OK")
</pallas_src>

<mosaic_0001>
module attributes {stable_mosaic.version = 11 : i64} {
  func.func @_proto_kernel(%arg0: i32, %arg1: memref<1xf32, #tpu.memory_space<smem>>, %arg2: memref<8x32xbf16, #tpu.memory_space<vmem>>, %arg3: memref<32x128xbf16, #tpu.memory_space<vmem>>, %arg4: memref<1x128xf32, #tpu.memory_space<vmem>>, %arg5: memref<8x128xf32, #tpu.memory_space<vmem>>) attributes {dimension_semantics = [#tpu.dimension_semantics<parallel>], iteration_bounds = array<i64: 1>, scalar_prefetch = 0 : i64, scratch_operands = 0 : i64, tpu.core_type = #tpu.core_type<tc>, window_params = [{transform_indices = @transform_0, window_bounds = array<i64: 1>}, {transform_indices = @transform_1, window_bounds = array<i64: 8, 32>}, {pipeline_mode = #tpu.pipeline_mode<synchronous>, transform_indices = @transform_2, window_bounds = array<i64: 32, 128>}, {pipeline_mode = #tpu.pipeline_mode<synchronous>, transform_indices = @transform_3, window_bounds = array<i64: 1, 128>}, {transform_indices = @transform_4, window_bounds = array<i64: 8, 128>}]} {
    %c0 = arith.constant 0 : index
    %0 = memref.load %arg1[%c0] : memref<1xf32, #tpu.memory_space<smem>>
    %c0_0 = arith.constant 0 : index
    %c0_1 = arith.constant 0 : index
    %1 = vector.load %arg2[%c0_0, %c0_1] : memref<8x32xbf16, #tpu.memory_space<vmem>>, vector<8x32xbf16>
    %2 = arith.extf %1 : vector<8x32xbf16> to vector<8x32xf32>
    %3 = arith.mulf %2, %2 : vector<8x32xf32>
    %cst = arith.constant dense<0.000000e+00> : vector<8xf32>
    %4 = vector.multi_reduction <add>, %3, %cst [1] : vector<8x32xf32> to vector<8xf32>
    %5 = vector.shape_cast %4 : vector<8xf32> to vector<8x1xf32>
    %c0_2 = arith.constant 0 : index
    %c0_3 = arith.constant 0 : index
    %6 = vector.load %arg3[%c0_2, %c0_3] : memref<32x128xbf16, #tpu.memory_space<vmem>>, vector<32x128xbf16>
    %cst_4 = arith.constant dense<0.000000e+00> : vector<8x128xf32>
    %7 = tpu.matmul %1, %6, %cst_4 {dimension_numbers = #tpu.dot_dimension_numbers<[1], [0], [0], [1], [0, 0, 1, 1], [], []>} : vector<8x32xbf16>, vector<32x128xbf16>, vector<8x128xf32> -> vector<8x128xf32>
    %c0_5 = arith.constant 0 : index
    %c0_6 = arith.constant 0 : index
    %8 = vector.load %arg4[%c0_5, %c0_6] : memref<1x128xf32, #tpu.memory_space<vmem>>, vector<1x128xf32>
    %9 = vector.broadcast %5 : vector<8x1xf32> to vector<8x128xf32>
    %10 = vector.broadcast %8 : vector<1x128xf32> to vector<8x128xf32>
    %11 = arith.addf %9, %10 : vector<8x128xf32>
    %cst_7 = arith.constant 2.000000e+00 : f32
    %12 = vector.broadcast %cst_7 : f32 to vector<8x128xf32>
    %13 = arith.mulf %12, %7 : vector<8x128xf32>
    %14 = arith.subf %11, %13 : vector<8x128xf32>
    %cst_8 = arith.constant 0.000000e+00 : f32
    %15 = vector.broadcast %cst_8 : f32 to vector<8x128xf32>
    %16 = arith.maximumf %14, %15 : vector<8x128xf32>
    %17 = math.sqrt %16 : vector<8x128xf32>
    %cst_9 = arith.constant 0.000000e+00 : f32
    %18 = vector.broadcast %cst_9 : f32 to vector<8x128xf32>
    %19 = arith.subf %18, %17 : vector<8x128xf32>
    %20 = vector.broadcast %0 : f32 to vector<8x128xf32>
    %21 = arith.mulf %19, %20 : vector<8x128xf32>
    %cst_10 = arith.constant dense<0xFF800000> : vector<8xf32>
    %22 = vector.multi_reduction <maximumf>, %21, %cst_10 [1] : vector<8x128xf32> to vector<8xf32>
    %23 = vector.shape_cast %22 : vector<8xf32> to vector<8x1xf32>
    %24 = vector.broadcast %23 : vector<8x1xf32> to vector<8x128xf32>
    %25 = arith.subf %21, %24 : vector<8x128xf32>
    %26 = math.exp %25 : vector<8x128xf32>
    %cst_11 = arith.constant dense<0.000000e+00> : vector<8xf32>
    %27 = vector.multi_reduction <add>, %26, %cst_11 [1] : vector<8x128xf32> to vector<8xf32>
    %28 = vector.shape_cast %27 : vector<8xf32> to vector<8x1xf32>
    %29 = tpu.reciprocal %28 {approx = true} : vector<8x1xf32> -> vector<8x1xf32>
    %30 = vector.broadcast %29 : vector<8x1xf32> to vector<8x128xf32>
    %31 = arith.mulf %26, %30 : vector<8x128xf32>
    %c0_12 = arith.constant 0 : index
    %c0_13 = arith.constant 0 : index
    %32 = vector.load %arg5[%c0_12, %c0_13] : memref<8x128xf32, #tpu.memory_space<vmem>>, vector<8x128xf32>
    tpu.vector_store %arg5[%c0_12, %c0_13], %31 {strides = array<i32>} : memref<8x128xf32, #tpu.memory_space<vmem>>, vector<8x128xf32>,
    return
  }
  func.func @transform_0(%arg0: i32) -> i32 {
    %c0_i32 = arith.constant 0 : i32
    %c0_i32_0 = arith.constant 0 : i32
    return %c0_i32 : i32
  }
  func.func @transform_1(%arg0: i32) -> (i32, i32) {
    %c0_i32 = arith.constant 0 : i32
    %c0_i32_0 = arith.constant 0 : i32
    return %arg0, %c0_i32 : i32, i32
  }
  func.func @transform_2(%arg0: i32) -> (i32, i32) {
    %c0_i32 = arith.constant 0 : i32
    %c0_i32_0 = arith.constant 0 : i32
    %c0_i32_1 = arith.constant 0 : i32
    return %c0_i32, %c0_i32_0 : i32, i32
  }
  func.func @transform_3(%arg0: i32) -> (i32, i32) {
    %c0_i32 = arith.constant 0 : i32
    %c0_i32_0 = arith.constant 0 : i32
    %c0_i32_1 = arith.constant 0 : i32
    return %c0_i32, %c0_i32_0 : i32, i32
  }
  func.func @transform_4(%arg0: i32) -> (i32, i32) {
    %c0_i32 = arith.constant 0 : i32
    %c0_i32_0 = arith.constant 0 : i32
    return %arg0, %c0_i32 : i32, i32
  }
}

</mosaic_0001>

<bundles_post_ra>
// kernel: tpu_custom_call.1
= control target key start
LH: loop header
LB: loop body
LE: loop exit
PB: predicated region body
PF: predicated region fallthrough
CT: control target
= control target key end

     0   :  { %10 = vsyncpa [#allocation4], 0  ;;  %s287_s0 = inlined_call_operand.<no memory space> [shape: f32[1], index: 0, kind: input, shape index: {}]   ;;  %s288_s1 = inlined_call_operand.hbm [shape: bf16[8,32], index: 1, kind: input, shape index: {}]   ;;  %s289_s2 = inlined_call_operand.hbm [shape: bf16[32,128], index: 2, kind: input, shape index: {}]   ;;  %s290_s3 = inlined_call_operand.vmem [shape: f32[1,128], index: 3, kind: input, shape index: {}]   ;;  %s291_s4 = inlined_call_operand.hbm [shape: f32[8,128], index: 4, kind: output, shape index: {}]  }
   0x1   :  { %11 = vsyncpa [#allocation7], 0 }
   0x2   :  { %12 = vsyncpa [#allocation5], 0  ;;  %s20_s17 = sshll.u32 %s288_s1, 4  ;;  %s242_s18 = smov [#allocation3]   ;;  %s21_s17 = int_to_ptr.hbm [resolvable:$true] %s20_s17 }
   0x3   :  { %s22_s19 = sshll.u32 %s242_s18, 4  ;;  %s30_s22 = sshll.u32 %s289_s2, 4  ;;  %s23_s19 = int_to_ptr.vmem [resolvable:$true] %s22_s19  ;;  %s31_s22 = int_to_ptr.hbm [resolvable:$true] %s30_s22 }
   0x4   :  { %25 = dma.hbm_to_vmem [thread:$0]  %s21_s17, 64, %s23_s19, [#allocation4]  }
   0x5   :  { %s243_s23 = smov [#allocation6]   ;;  %s244_s25 = smov 64  }
   0x6   :  { %s32_s24 = sshll.u32 %s243_s23, 4  ;;  %s245_s26 = smov 4   ;;  %s33_s24 = int_to_ptr.vmem [resolvable:$true] %s32_s24 }
   0x7   :  { %38 = dma.hbm_to_vmem [thread:$0]  %s31_s22, 256, %s33_s24, [#allocation7], %s244_s25, %s244_s25, %s245_s26  }
   0x8   :  { %236 = dma.done.wait [#allocation4], 64  }
   0x9   :  { %237 = vsyncadd [#allocation4], 4294967232 }
   0xa   :  { %238 = dma.done.wait [#allocation7], 256  }
   0xb   :  { %239 = vsyncadd [#allocation7], 4294967040  ;;  %v151_v0 = vld [vmem:[#allocation6 + $0x8] sm:$0xff]  ;;  %v51_v1 = vld [vmem:[#allocation3] sm:$0xf]  ;;  %vm54_vm0 = vcmask 261120   ;;  %v111_v24 = vstv %s287_s0 }
   0xc   :  { %v52_v2 = vunpack.c.l.bf16 %v51_v1  ;;  %83 = vmatpush.bf16.msra.mxu0 %v151_v0  ;;  %v150_v3 = vld [vmem:[#allocation6] sm:$0xff]  ;;  %v157_v6 = vld [vmem:[%s290_s3] ss:$0 sm:$0xff]  ;;  %s246_s28 = smov [#allocation8]   ;;  %s130_s6 = sshll.u32 %s291_s4, 4  ;;  %s131_s6 = int_to_ptr.hbm [resolvable:$true] %s130_s6 }
   0xd   :  { %s128_s29 = sshll.u32 %s246_s28, 4  ;;  %s129_s29 = int_to_ptr.vmem [resolvable:$true] %s128_s29 }
   0xe   :  { %v53_v4 = vmul.f32 %v52_v2, %v52_v2 }
  0x10   :  { %v55_v5 = vsel %vm54_vm0, %v53_v4, 0.0  ;;  %84 = vmatpush.bf16.msra.mxu0 %v150_v3 }
  0x11   :  { %56 = vadd.xlane.f32.xlu0 %v55_v5 }
  0x13   :  { %149 = vmatmul.msk.bf16.vlgmr.msra.gmra.mxu0 %vm54_vm0, %v51_v1 }
  0x84   :  { %v57_v7 = vpop.xlane.xlu0 %56 }
  0x85   :  { %v94_v8 = vadd.f32 %v157_v6, %v57_v7 }
  0x90   :  { %v86_v9 = vpop.f32.mrf.mxu0 }
  0x91   :  { %v95_v10 = vmul.f32 2.0, %v86_v9 }
  0x93   :  { %v96_v11 = vsub.f32 %v94_v8, %v95_v10 }
  0x95   :  { %v97_v12 = vmax.f32 %v96_v11, 0.0 }
  0x97   :  { %158 = vrsqrt.f32 %v97_v12  ;;  %vm105_vm1 = vcmp.eq.f32.partialorder %v97_v12, inf  ;;  %v108_v21 = vand.u32 2147483648, %v97_v12  ;;  %vm107_vm2 = vcmp.eq.f32.partialorder %v97_v12, 0.0 }
  0x98   :  { %v88_v13 = vpop.f32.mrf.mxu0 }
  0x9d   :  { %v159_v14 = vpop.eup %158 }
  0x9e   :  { %v99_v15 = vmul.f32 %v159_v14, %v97_v12 }
  0xa0   :  { %v100_v16 = vmul.f32 %v159_v14, %v99_v15 }
  0xa2   :  { %v101_v17 = vmul.f32 0.5, %v100_v16 }
  0xa4   :  { %v102_v18 = vsub.f32 1.5, %v101_v17 }
  0xa6   :  { %v103_v19 = vmul.f32 %v159_v14, %v102_v18 }
  0xa8   :  { %v104_v20 = vmul.f32 %v103_v19, %v97_v12 }
  0xaa   :  { %v106_v22 = vsel %vm105_vm1, %v97_v12, %v104_v20 }
  0xab   :  { %v109_v23 = vsel %vm107_vm2, %v108_v21, %v106_v22 }
  0xac   :  { %v110_v25 = vsub.f32 0.0, %v109_v23 }
  0xae   :  { %v112_v26 = vmul.f32 %v111_v24, %v110_v25 }
  0xb0   :  { %113 = vmax.xlane.f32.xlu0 %v112_v26 }
 0x123   :  { %v114_v27 = vpop.xlane.xlu0 %113 }
 0x124   :  { %v115_v28 = vsub.f32 %v112_v26, %v114_v27 }
 0x126   :  { %v116_v29 = vmul.f32 1.442695, %v115_v28 }
 0x128   :  { %160 = vpow2.f32 %v116_v29 }
 0x12e   :  { %v161_v30 = vpop.eup %160 }
 0x12f   :  { %118 = vadd.xlane.f32.xlu1 %v161_v30 }
 0x1a2   :  { %v119_v31 = vpop.xlane.xlu1 %118 }
 0x1a3   :  { %162 = vrcp.f32 %v119_v31 }
 0x1a9   :  { %v163_v32 = vpop.eup %162 }
 0x1aa   :  { %v121_v33 = vmul.f32 %v163_v32, %v161_v30 }
 0x1ac   :  { %122 = vst [vmem:[#allocation8] sm:$0xff] %v121_v33 }
 0x1ad   :  { %133 = dma.vmem_to_hbm [thread:$0]  %s129_s29, 128, %s131_s6, [#allocation5]  }
 0x1ae   :  { %240 = dma.done.wait [#allocation5], 128  }
 0x1af   :  { %241 = vsyncadd [#allocation5], 4294967168 }
 0x1b0   :  { %138 = vsyncpa [#allocation4], 1 }
 0x1b1   :  { %139 = vsyncpa [#allocation7], 1 }
 0x1b2   :  { %140 = vsyncpa [#allocation5], 1 }

</bundles_post_ra>
